<compile_context>
chip_gen: v7x
topology: tpu7x:2x2x1
jax: 0.10.0
libtpu: 0.0.40
codegen_flags: <defaults>
</compile_context>

<pallas_src>
import jax
import jax.numpy as jnp
from jax.experimental import pallas as pl
from jax.experimental.pallas import tpu as pltpu


def _make_norm_kernel(dim: int, eps: float):
    # Unbiased (ddof=1) normalization factor. For dim == 1 torch.std returns NaN;
    # mirror that instead of raising at trace time.
    inv_dof = 1.0 / (dim - 1) if dim > 1 else float("nan")

    def norm_kernel(x_ref, alpha_ref, bias_ref, o_ref):
        # x_ref block: (Bt, D, TL); alpha_ref/bias_ref: (D, 1)
        x = x_ref[...].astype(jnp.float32)                        # (Bt, D, TL)
        avg = jnp.mean(x, axis=-2, keepdims=True)                 # (Bt, 1, TL)
        diff = x - avg                                            # (Bt, D, TL)
        # Two-pass variance (numerically stable), unbiased to match torch.std.
        var = jnp.sum(diff * diff, axis=-2, keepdims=True) * inv_dof
        std = jnp.sqrt(var) + eps                                 # (Bt, 1, TL)
        # Reciprocal of the small (Bt, 1, TL) vector, then broadcast-multiply:
        # converts D*TL divides into TL reciprocals + D*TL muls.
        inv_std = pl.reciprocal(std, approx=False)                # exact: keeps 1e-5 tol
        alpha = alpha_ref[...].astype(jnp.float32)                # (D, 1)
        bias = bias_ref[...].astype(jnp.float32)                  # (D, 1)
        o_ref[...] = (alpha * (diff * inv_std) + bias).astype(o_ref.dtype)

    return norm_kernel


def _choose_tiles(B: int, D: int, L: int, max_block_elems: int = 256 * 1024):
    """Pick (Bt, TL): lane tile TL (multiple of 128 when possible) and batch tile Bt.

    max_block_elems = 256K f32 elements per block (1 MiB). With double-buffered
    input + output that is <= 4 MiB of VMEM per step -- safe on v5e (16 MiB scoped
    default), v6e (32 MiB) and v7x (64 MiB physical).
    """
    if L % 128 == 0:
        TL = 128
        for cand in (2048, 1024, 512, 256, 128):
            if L % cand == 0 and D * cand <= max_block_elems:
                TL = cand
                break
    else:
        # Lane dim not a 128-multiple: take the full extent (allowed by Pallas).
        # TODO(synk): for small L a wrapper-side reshape to a lane-dense (D, B*L)
        # layout would avoid masked stores; kept as-is to preserve the (B, D, L) API.
        TL = L

    # Largest divisor of B such that the block stays under budget (amortizes the
    # fixed per-grid-step overhead when D*TL is small).
    Bt = 1
    for cand in range(1, B + 1):
        if B % cand == 0 and cand * D * TL <= max_block_elems:
            Bt = cand
    return Bt, TL


def norm_forward(x, alpha, bias, eps=1e-6):
    """x: (B, D, L); alpha, bias: (D, 1)."""
    B, D, L = x.shape
    Bt, TL = _choose_tiles(B, D, L)
    kernel = _make_norm_kernel(D, eps)

    return pl.pallas_call(
        kernel,
        out_shape=jax.ShapeDtypeStruct((B, D, L), x.dtype),
        grid_spec=pltpu.PrefetchScalarGridSpec(
            num_scalar_prefetch=0,
            grid=(B // Bt, L // TL),
            in_specs=[
                pl.BlockSpec((Bt, D, TL), lambda b, l: (b, 0, l)),  # x tile
                pl.BlockSpec((D, 1), lambda b, l: (0, 0)),          # alpha (resident)
                pl.BlockSpec((D, 1), lambda b, l: (0, 0)),          # bias  (resident)
            ],
            out_specs=pl.BlockSpec((Bt, D, TL), lambda b, l: (b, 0, l)),
        ),
        compiler_params=pltpu.CompilerParams(
            # Both axes are independent -> shardable across v7x's 2 TensorCores.
            dimension_semantics=("parallel", "parallel"),
            # Explicit, generation-safe VMEM budget (blocks are <= ~4 MiB total).
            vmem_limit_bytes=32 * 1024 * 1024,
        ),
    )(x, alpha, bias)


def norm_reference(x, alpha, bias, eps=1e-6):
    avg = jnp.mean(x, axis=-2, keepdims=True)
    std = jnp.std(x, axis=-2, keepdims=True, ddof=1) + eps
    return alpha * (x - avg) / std + bias


if __name__ == "__main__":
    key = jax.random.PRNGKey(0)

    # Deterministic parameters mirroring nn.Parameter(torch.ones/zeros((dim, 1))).
    # Case 1: the original small-L shape (full-extent lane block).
    B, D, L = 2, 32, 16
    k1, k2 = jax.random.split(key)
    x_small = jax.random.normal(k1, (B, D, L), dtype=jnp.float32)
    alpha = jnp.ones((D, 1), dtype=jnp.float32)
    bias = jnp.zeros((D, 1), dtype=jnp.float32)

    out_small = jax.block_until_ready(norm_forward(x_small, alpha, bias))
    ref_small = norm_reference(x_small, alpha, bias)
    assert out_small.shape == (B, D, L)
    assert jnp.allclose(out_small, ref_small, atol=1e-5, rtol=1e-5)

    # Case 2: lane-dense shape exercising the L-tiled grid path.
    B2, D2, L2 = 4, 32, 256
    x_big = jax.random.normal(k2, (B2, D2, L2), dtype=jnp.float32)
    alpha2 = jnp.ones((D2, 1), dtype=jnp.float32)
    bias2 = jnp.zeros((D2, 1), dtype=jnp.float32)

    out_big = jax.block_until_ready(norm_forward(x_big, alpha2, bias2))
    ref_big = norm_reference(x_big, alpha2, bias2)
    assert out_big.shape == (B2, D2, L2)
    assert jnp.allclose(out_big, ref_big, atol=1e-5, rtol=1e-5)

    print("KERNEL_OK")
</pallas_src>

<mosaic_0001>
module attributes {stable_mosaic.version = 11 : i64} {
  func.func @norm_kernel(%arg0: i32, %arg1: i32, %arg2: memref<2x32x16xf32, #tpu.memory_space<vmem>>, %arg3: memref<32x1xf32, #tpu.memory_space<vmem>>, %arg4: memref<32x1xf32, #tpu.memory_space<vmem>>, %arg5: memref<2x32x16xf32, #tpu.memory_space<vmem>>) attributes {dimension_semantics = [#tpu.dimension_semantics<parallel>, #tpu.dimension_semantics<parallel>], iteration_bounds = array<i64: 1, 1>, scalar_prefetch = 0 : i64, scratch_operands = 0 : i64, tpu.core_type = #tpu.core_type<tc>, window_params = [{transform_indices = @transform_0, window_bounds = array<i64: 2, 32, 16>}, {pipeline_mode = #tpu.pipeline_mode<synchronous>, transform_indices = @transform_1, window_bounds = array<i64: 32, 1>}, {pipeline_mode = #tpu.pipeline_mode<synchronous>, transform_indices = @transform_2, window_bounds = array<i64: 32, 1>}, {transform_indices = @transform_3, window_bounds = array<i64: 2, 32, 16>}]} {
    %c0 = arith.constant 0 : index
    %c0_0 = arith.constant 0 : index
    %c0_1 = arith.constant 0 : index
    %0 = vector.load %arg2[%c0, %c0_0, %c0_1] : memref<2x32x16xf32, #tpu.memory_space<vmem>>, vector<2x32x16xf32>
    %cst = arith.constant dense<0.000000e+00> : vector<2x16xf32>
    %1 = vector.multi_reduction <add>, %0, %cst [1] : vector<2x32x16xf32> to vector<2x16xf32>
    %2 = vector.shape_cast %1 : vector<2x16xf32> to vector<2x1x16xf32>
    %cst_2 = arith.constant 3.200000e+01 : f32
    %3 = vector.broadcast %cst_2 : f32 to vector<2x1x16xf32>
    %4 = arith.divf %2, %3 : vector<2x1x16xf32>
    %5 = vector.broadcast %4 : vector<2x1x16xf32> to vector<2x32x16xf32>
    %6 = arith.subf %0, %5 : vector<2x32x16xf32>
    %7 = arith.mulf %6, %6 : vector<2x32x16xf32>
    %cst_3 = arith.constant dense<0.000000e+00> : vector<2x16xf32>
    %8 = vector.multi_reduction <add>, %7, %cst_3 [1] : vector<2x32x16xf32> to vector<2x16xf32>
    %9 = vector.shape_cast %8 : vector<2x16xf32> to vector<2x1x16xf32>
    %cst_4 = arith.constant 0.0322580636 : f32
    %10 = vector.broadcast %cst_4 : f32 to vector<2x1x16xf32>
    %11 = arith.mulf %9, %10 : vector<2x1x16xf32>
    %12 = math.sqrt %11 : vector<2x1x16xf32>
    %cst_5 = arith.constant 9.99999997E-7 : f32
    %13 = vector.broadcast %cst_5 : f32 to vector<2x1x16xf32>
    %14 = arith.addf %12, %13 : vector<2x1x16xf32>
    %15 = tpu.reciprocal %14 : vector<2x1x16xf32> -> vector<2x1x16xf32>
    %c0_6 = arith.constant 0 : index
    %c0_7 = arith.constant 0 : index
    %16 = vector.load %arg3[%c0_6, %c0_7] : memref<32x1xf32, #tpu.memory_space<vmem>>, vector<32x1xf32>
    %c0_8 = arith.constant 0 : index
    %c0_9 = arith.constant 0 : index
    %17 = vector.load %arg4[%c0_8, %c0_9] : memref<32x1xf32, #tpu.memory_space<vmem>>, vector<32x1xf32>
    %18 = vector.broadcast %15 : vector<2x1x16xf32> to vector<2x32x16xf32>
    %19 = arith.mulf %6, %18 : vector<2x32x16xf32>
    %20 = vector.shape_cast %16 : vector<32x1xf32> to vector<1x32x1xf32>
    %21 = vector.broadcast %20 : vector<1x32x1xf32> to vector<2x32x16xf32>
    %22 = arith.mulf %21, %19 : vector<2x32x16xf32>
    %23 = vector.shape_cast %17 : vector<32x1xf32> to vector<1x32x1xf32>
    %24 = vector.broadcast %23 : vector<1x32x1xf32> to vector<2x32x16xf32>
    %25 = arith.addf %22, %24 : vector<2x32x16xf32>
    %c0_10 = arith.constant 0 : index
    %c0_11 = arith.constant 0 : index
    %c0_12 = arith.constant 0 : index
    %26 = vector.load %arg5[%c0_10, %c0_11, %c0_12] : memref<2x32x16xf32, #tpu.memory_space<vmem>>, vector<2x32x16xf32>
    tpu.vector_store %arg5[%c0_10, %c0_11, %c0_12], %25 {strides = array<i32>} : memref<2x32x16xf32, #tpu.memory_space<vmem>>, vector<2x32x16xf32>,
    return
  }
  func.func @transform_0(%arg0: i32, %arg1: i32) -> (i32, i32, i32) {
    %c0_i32 = arith.constant 0 : i32
    %c0_i32_0 = arith.constant 0 : i32
    return %arg0, %c0_i32, %arg1 : i32, i32, i32
  }
  func.func @transform_1(%arg0: i32, %arg1: i32) -> (i32, i32) {
    %c0_i32 = arith.constant 0 : i32
    %c0_i32_0 = arith.constant 0 : i32
    %c0_i32_1 = arith.constant 0 : i32
    return %c0_i32, %c0_i32_0 : i32, i32
  }
  func.func @transform_2(%arg0: i32, %arg1: i32) -> (i32, i32) {
    %c0_i32 = arith.constant 0 : i32
    %c0_i32_0 = arith.constant 0 : i32
    %c0_i32_1 = arith.constant 0 : i32
    return %c0_i32, %c0_i32_0 : i32, i32
  }
  func.func @transform_3(%arg0: i32, %arg1: i32) -> (i32, i32, i32) {
    %c0_i32 = arith.constant 0 : i32
    %c0_i32_0 = arith.constant 0 : i32
    return %arg0, %c0_i32, %arg1 : i32, i32, i32
  }
}

</mosaic_0001>

<bundles_post_ra>
// kernel: tpu_custom_call.1
= control target key start
LH: loop header
LB: loop body
LE: loop exit
PB: predicated region body
PF: predicated region fallthrough
CT: control target
= control target key end

     0   :  { %v209_v0 = vmov 0   ;;  %vm22_vm0 = vcmask 130048   ;;  %s366_s1 = inlined_call_operand.vmem [shape: f32[32,1], index: 1, kind: input, shape index: {}]   ;;  %s367_s0 = inlined_call_operand.vmem [shape: f32[2,32,16], index: 0, kind: input, shape index: {}]   ;;  %s368_s2 = inlined_call_operand.vmem [shape: f32[32,1], index: 2, kind: input, shape index: {}]   ;;  %s369_s3 = inlined_call_operand.vmem [shape: f32[2,32,16], index: 3, kind: output, shape index: {}]  }
   0x1   :  { %200 = vset.pattern.permute.xlu1 %v209_v0  ;;  %199 = vset.pattern.permute.xlu0 %v209_v0  ;;  %v116_v1 = vld [vmem:[%s366_s1 + $0x10] sm:$0xff]  ;;  %v114_v2 = vld [vmem:[%s366_s1] sm:$0xff]  ;;  %v117_v3 = vld [vmem:[%s366_s1 + $0x18] sm:$0xff] }
   0x2   :  { %142 = vperm.xlu1 %200, %v116_v1   ;;  %132 = vperm.xlu0 %199, %v114_v2   ;;  %v115_v4 = vld [vmem:[%s366_s1 + $0x8] sm:$0xff]  ;;  %v14_v5 = vld [vmem:[%s367_s0] sm:$0xff]  ;;  %v16_v7 = vld [vmem:[%s367_s0 + $0x10] sm:$0xff] }
   0x3   :  { %v15_v6 = vld [vmem:[%s367_s0 + $0x8] sm:$0xff]  ;;  %v17_v8 = vld [vmem:[%s367_s0 + $0x18] sm:$0xff]  ;;  %v23_v9 = vsel %vm22_vm0, %v14_v5, 0.0  ;;  %v18_v10 = vld [vmem:[%s367_s0 + $0x20] sm:$0xff]  ;;  %v26_v14 = vsel %vm22_vm0, %v16_v7, 0.0 }
   0x4   :  { %v19_v11 = vld [vmem:[%s367_s0 + $0x28] sm:$0xff]  ;;  %v20_v12 = vld [vmem:[%s367_s0 + $0x30] sm:$0xff]  ;;  %v24_v13 = vsel %vm22_vm0, %v15_v6, 0.0  ;;  %v21_v15 = vld [vmem:[%s367_s0 + $0x38] sm:$0xff]  ;;  %v36_v17 = vsel %vm22_vm0, %v18_v10, 0.0  ;;  %v28_v22 = vsel %vm22_vm0, %v17_v8, 0.0 }
   0x5   :  { %v25_v16 = vadd.f32 %v24_v13, %v23_v9  ;;  %v37_v18 = vsel %vm22_vm0, %v19_v11, 0.0  ;;  %v39_v19 = vsel %vm22_vm0, %v20_v12, 0.0  ;;  %v119_v20 = vld [vmem:[%s368_s2 + $0x8] sm:$0xff]  ;;  %v118_v21 = vld [vmem:[%s368_s2] sm:$0xff]  ;;  %v41_v25 = vsel %vm22_vm0, %v21_v15, 0.0  ;;  %v121_v28 = vld [vmem:[%s368_s2 + $0x18] sm:$0xff] }
   0x6   :  { %147 = vperm.xlu1 %200, %v117_v3   ;;  %137 = vperm.xlu0 %199, %v115_v4   ;;  %v38_v23 = vadd.f32 %v37_v18, %v36_v17  ;;  %v120_v29 = vld [vmem:[%s368_s2 + $0x10] sm:$0xff] }
   0x7   :  { %v27_v24 = vadd.f32 %v26_v14, %v25_v16 }
   0x8   :  { %v40_v26 = vadd.f32 %v39_v19, %v38_v23 }
   0x9   :  { %v29_v27 = vadd.f32 %v28_v22, %v27_v24 }
   0xa   :  { %165 = vperm.xlu1 %200, %v119_v20   ;;  %160 = vperm.xlu0 %199, %v118_v21   ;;  %v42_v30 = vadd.f32 %v41_v25, %v40_v26 }
   0xb   :  { %v30_v31 = vrot.slane %v29_v27, 4 }
   0xc   :  { %v43_v32 = vrot.slane %v42_v30, 4 }
   0xd   :  { %v31_v33 = vadd.f32 %v30_v31, %v29_v27 }
   0xe   :  { %175 = vperm.xlu1 %200, %v121_v28   ;;  %170 = vperm.xlu0 %199, %v120_v29   ;;  %v44_v34 = vadd.f32 %v43_v32, %v42_v30 }
   0xf   :  { %v32_v35 = vrot.slane %v31_v33, 2 }
  0x10   :  { %v45_v36 = vrot.slane %v44_v34, 2 }
  0x11   :  { %v33_v37 = vadd.f32 %v32_v35, %v31_v33 }
  0x12   :  { %v46_v38 = vadd.f32 %v45_v36, %v44_v34 }
  0x13   :  { %v34_v39 = vrot.slane %v33_v37, 1 }
  0x14   :  { %v47_v40 = vrot.slane %v46_v38, 1 }
  0x15   :  { %v35_v41 = vadd.f32 %v34_v39, %v33_v37 }
  0x16   :  { %v48_v42 = vadd.f32 %v47_v40, %v46_v38 }
  0x17   :  { %v50_v43 = vmul.f32 0.03125, %v35_v41 }
  0x18   :  { %v51_v44 = vmul.f32 0.03125, %v48_v42 }
  0x19   :  { %v286_v45 = vsub.f32 %v14_v5, %v50_v43  ;;  %v288_v46 = vsub.f32 %v15_v6, %v50_v43  ;;  %v294_v49 = vsub.f32 %v16_v7, %v50_v43  ;;  %v306_v55 = vsub.f32 %v17_v8, %v50_v43 }
  0x1a   :  { %v290_v47 = vsub.f32 %v18_v10, %v51_v44  ;;  %v292_v48 = vsub.f32 %v19_v11, %v51_v44  ;;  %v300_v52 = vsub.f32 %v20_v12, %v51_v44  ;;  %v312_v59 = vsub.f32 %v21_v15, %v51_v44 }
  0x1b   :  { %v60_v50 = vmul.f32 %v286_v45, %v286_v45  ;;  %v61_v51 = vmul.f32 %v288_v46, %v288_v46  ;;  %v62_v56 = vmul.f32 %v294_v49, %v294_v49  ;;  %v63_v0 = vmul.f32 %v306_v55, %v306_v55 }
  0x1c   :  { %v64_v53 = vmul.f32 %v290_v47, %v290_v47  ;;  %v65_v54 = vmul.f32 %v292_v48, %v292_v48  ;;  %v66_v60 = vmul.f32 %v300_v52, %v300_v52  ;;  %v67_v3 = vmul.f32 %v312_v59, %v312_v59 }
  0x1d   :  { %v68_v57 = vsel %vm22_vm0, %v60_v50, 0.0  ;;  %v69_v58 = vsel %vm22_vm0, %v61_v51, 0.0  ;;  %v71_v1 = vsel %vm22_vm0, %v62_v56, 0.0  ;;  %v73_v6 = vsel %vm22_vm0, %v63_v0, 0.0 }
  0x1e   :  { %v81_v61 = vsel %vm22_vm0, %v64_v53, 0.0  ;;  %v82_v62 = vsel %vm22_vm0, %v65_v54, 0.0  ;;  %v70_v63 = vadd.f32 %v69_v58, %v68_v57  ;;  %v84_v4 = vsel %vm22_vm0, %v66_v60, 0.0 }
  0x1f   :  { %v83_v2 = vadd.f32 %v82_v62, %v81_v61  ;;  %v86_v8 = vsel %vm22_vm0, %v67_v3, 0.0 }
  0x20   :  { %v72_v5 = vadd.f32 %v71_v1, %v70_v63 }
  0x21   :  { %v85_v7 = vadd.f32 %v84_v4, %v83_v2 }
  0x22   :  { %v74_v9 = vadd.f32 %v73_v6, %v72_v5 }
  0x23   :  { %v87_v10 = vadd.f32 %v86_v8, %v85_v7 }
  0x24   :  { %v75_v11 = vrot.slane %v74_v9, 4 }
  0x25   :  { %v88_v12 = vrot.slane %v87_v10, 4 }
  0x26   :  { %v76_v13 = vadd.f32 %v75_v11, %v74_v9 }
  0x27   :  { %v89_v14 = vadd.f32 %v88_v12, %v87_v10 }
  0x28   :  { %v77_v15 = vrot.slane %v76_v13, 2 }
  0x29   :  { %v90_v16 = vrot.slane %v89_v14, 2 }
  0x2a   :  { %v78_v17 = vadd.f32 %v77_v15, %v76_v13 }
  0x2b   :  { %v91_v18 = vadd.f32 %v90_v16, %v89_v14 }
  0x2c   :  { %v79_v19 = vrot.slane %v78_v17, 1 }
  0x2d   :  { %v92_v20 = vrot.slane %v91_v18, 1 }
  0x2e   :  { %v80_v21 = vadd.f32 %v79_v19, %v78_v17 }
  0x2f   :  { %v93_v22 = vadd.f32 %v92_v20, %v91_v18 }
  0x30   :  { %v94_v23 = vmul.f32 0.032258064, %v80_v21 }
  0x31   :  { %v95_v24 = vmul.f32 0.032258064, %v93_v22 }
  0x32   :  { %201 = vrsqrt.f32 %v94_v23  ;;  %vm98_vm1 = vcmp.eq.f32.partialorder %v94_v23, inf  ;;  %v101_v29 = vand.u32 2147483648, %v94_v23  ;;  %vm100_vm3 = vcmp.eq.f32.partialorder %v94_v23, 0.0 }
  0x33   :  { %203 = vrsqrt.f32 %v95_v24  ;;  %vm105_vm2 = vcmp.eq.f32.partialorder %v95_v24, inf  ;;  %v108_v31 = vand.u32 2147483648, %v95_v24  ;;  %vm107_vm4 = vcmp.eq.f32.partialorder %v95_v24, 0.0 }
  0x3c   :  { %v202_v25 = vpop.eup %201 }
  0x3d   :  { %v204_v26 = vpop.eup %203  ;;  %v97_v27 = vmul.f32 %v202_v25, %v94_v23 }
  0x3e   :  { %v104_v28 = vmul.f32 %v204_v26, %v95_v24 }
  0x3f   :  { %v99_v30 = vsel %vm98_vm1, %v94_v23, %v97_v27 }
  0x40   :  { %v106_v32 = vsel %vm105_vm2, %v95_v24, %v104_v28  ;;  %v102_v33 = vsel %vm100_vm3, %v101_v29, %v99_v30 }
  0x41   :  { %v109_v34 = vsel %vm107_vm4, %v108_v31, %v106_v32  ;;  %v110_v35 = vadd.f32 1e-06, %v102_v33 }
  0x42   :  { %v111_v36 = vadd.f32 1e-06, %v109_v34 }
  0x43   :  { %205 = vrcp.f32 %v110_v35 }
  0x44   :  { %207 = vrcp.f32 %v111_v36 }
  0x4d   :  { %v206_v37 = vpop.eup %205 }
  0x4e   :  { %v208_v38 = vpop.eup %207  ;;  %v122_v41 = vmul.f32 %v206_v37, %v286_v45  ;;  %v123_v43 = vmul.f32 %v206_v37, %v288_v46  ;;  %v124_v53 = vmul.f32 %v206_v37, %v294_v49  ;;  %v125_v56 = vmul.f32 %v206_v37, %v306_v55 }
  0x4f   :  { %v126_v42 = vmul.f32 %v208_v38, %v290_v47  ;;  %v127_v44 = vmul.f32 %v208_v38, %v292_v48  ;;  %v128_v54 = vmul.f32 %v208_v38, %v300_v52  ;;  %v129_v57 = vmul.f32 %v208_v38, %v312_v59 }
  0x81   :  { %v143_v39 = vpop.permute.xlu1 %142  ;;  %v133_v40 = vpop.permute.xlu0 %132 }
  0x82   :  { %v150_v58 = vmul.f32 %v133_v40, %v122_v41  ;;  %v154_v60 = vmul.f32 %v133_v40, %v126_v42  ;;  %v152_v1 = vmul.f32 %v143_v39, %v124_v53  ;;  %v156_v2 = vmul.f32 %v143_v39, %v128_v54 }
  0x85   :  { %v148_v50 = vpop.permute.xlu1 %147  ;;  %v138_v51 = vpop.permute.xlu0 %137 }
  0x86   :  { %v151_v61 = vmul.f32 %v138_v51, %v123_v43  ;;  %v155_v45 = vmul.f32 %v138_v51, %v127_v44  ;;  %v153_v3 = vmul.f32 %v148_v50, %v125_v56  ;;  %v157_v49 = vmul.f32 %v148_v50, %v129_v57 }
  0x89   :  { %v166_v62 = vpop.permute.xlu1 %165  ;;  %v161_v47 = vpop.permute.xlu0 %160 }
  0x8a   :  { %v179_v63 = vadd.f32 %v166_v62, %v151_v61  ;;  %v183_v46 = vadd.f32 %v166_v62, %v155_v45  ;;  %v178_v0 = vadd.f32 %v161_v47, %v150_v58  ;;  %v182_v48 = vadd.f32 %v161_v47, %v154_v60 }
  0x8c   :  { %187 = vst.msk [vmem:[%s369_s3 + $0x8] sm:$0xff] %vm22_vm0, %v179_v63  ;;  %191 = vst.msk [vmem:[%s369_s3 + $0x28] sm:$0xff] %vm22_vm0, %v183_v46 }
  0x8d   :  { %186 = vst.msk [vmem:[%s369_s3] sm:$0xff] %vm22_vm0, %v178_v0  ;;  %190 = vst.msk [vmem:[%s369_s3 + $0x20] sm:$0xff] %vm22_vm0, %v182_v48  ;;  %v176_v52 = vpop.permute.xlu1 %175  ;;  %v171_v55 = vpop.permute.xlu0 %170 }
  0x8e   :  { %v181_v59 = vadd.f32 %v176_v52, %v153_v3  ;;  %v185_v4 = vadd.f32 %v176_v52, %v157_v49  ;;  %v180_v5 = vadd.f32 %v171_v55, %v152_v1  ;;  %v184_v6 = vadd.f32 %v171_v55, %v156_v2 }
  0x90   :  { %189 = vst.msk [vmem:[%s369_s3 + $0x18] sm:$0xff] %vm22_vm0, %v181_v59  ;;  %193 = vst.msk [vmem:[%s369_s3 + $0x38] sm:$0xff] %vm22_vm0, %v185_v4 }
  0x91   :  { %188 = vst.msk [vmem:[%s369_s3 + $0x10] sm:$0xff] %vm22_vm0, %v180_v5  ;;  %192 = vst.msk [vmem:[%s369_s3 + $0x30] sm:$0xff] %vm22_vm0, %v184_v6 }

</bundles_post_ra>
